<compile_context>
chip_gen: v7x
topology: tpu7x:2x2x1
jax: 0.10.0
libtpu: 0.0.40
codegen_flags: <defaults>
</compile_context>

<pallas_src>
import functools

import jax
import jax.numpy as jnp
from jax.experimental import pallas as pl
from jax.experimental.pallas import tpu as pltpu

LANES = 512            # lane-dense last dim (multiple of 128)
MAX_BLOCK_ROWS = 512   # (512, 512) f32 block = 1 MiB per array per buffer
_VMEM_LIMIT = 32 * 1024 * 1024


def _round_up(a, b):
    return (a + b - 1) // b * b


def _pow(x, gamma):
    """pow specialized for small integer exponents (default gamma=2.0)."""
    g = float(gamma)
    if g == int(g) and 0.0 <= g <= 4.0:
        gi = int(g)
        if gi == 0:
            return jnp.ones_like(x)
        y = x
        for _ in range(gi - 1):
            y = y * x
        return y
    return jnp.power(x, g)


def _focal_elementwise(x, t, alpha, gamma, eps):
    # Literal kornia formulation (keeps the original saturation behavior).
    p = jax.nn.sigmoid(x)
    return (-alpha * _pow(1.0 - p + eps, gamma) * t * jnp.log(p + eps)
            - (1.0 - alpha) * _pow(p + eps, gamma) * (1.0 - t)
            * jnp.log(1.0 - p + eps))


# --------------------------------------------------------------------------
# Kernels
# --------------------------------------------------------------------------
def _focal_none_kernel(x_ref, t_ref, o_ref, *, alpha, gamma, eps):
    x = x_ref[...].astype(jnp.float32)
    t = t_ref[...].astype(jnp.float32)
    o_ref[...] = _focal_elementwise(x, t, alpha, gamma, eps).astype(o_ref.dtype)


def _focal_reduce_kernel(x_ref, t_ref, o_ref, acc_ref, *,
                         alpha, gamma, eps, inv_denom, n_valid, block_rows,
                         need_mask):
    i = pl.program_id(0)

    @pl.when(i == 0)
    def _():
        acc_ref[...] = jnp.zeros_like(acc_ref)

    x = x_ref[...].astype(jnp.float32)
    t = t_ref[...].astype(jnp.float32)
    loss = _focal_elementwise(x, t, alpha, gamma, eps)

    if need_mask:
        # Zero the padded tail: keep only global flat indices < n_valid.
        row = jax.lax.broadcasted_iota(jnp.int32, loss.shape, 0)
        lane = jax.lax.broadcasted_iota(jnp.int32, loss.shape, 1)
        flat = (i * block_rows + row) * LANES + lane
        loss = jnp.where(flat < n_valid, loss, 0.0)

    # Vector accumulator: pure VPU adds per step; one XLU reduce at the end.
    acc_ref[...] += loss

    @pl.when(i == pl.num_programs(0) - 1)
    def _():
        o_ref[0, 0] = jnp.sum(acc_ref[...]) * inv_denom


# --------------------------------------------------------------------------
# Wrapper
# --------------------------------------------------------------------------
def binary_focal_loss_with_logits(inputs, target, alpha=0.25, gamma=2.0,
                                  reduction="none", eps=1e-8):
    if inputs.ndim < 2:
        raise ValueError(f"Invalid input shape, expect BxCx*. Got: {inputs.shape}")
    if inputs.shape[0] != target.shape[0]:
        raise ValueError("Batch sizes of input and target must match.")
    if reduction not in ("none", "mean", "sum"):
        raise NotImplementedError(f"Invalid reduction mode: {reduction}")

    orig_shape = inputs.shape
    out_dtype = inputs.dtype
    n = int(inputs.size)

    if not jnp.issubdtype(target.dtype, jnp.floating):
        target = target.astype(inputs.dtype)

    rows = -(-n // LANES)
    block_rows = min(MAX_BLOCK_ROWS, _round_up(rows, 8))
    rows_padded = _round_up(rows, block_rows)
    padded_n = rows_padded * LANES
    num_blocks = rows_padded // block_rows
    need_pad = padded_n != n

    x_flat = inputs.reshape(-1)
    t_flat = target.reshape(-1)
    if need_pad:
        x_flat = jnp.pad(x_flat, (0, padded_n - n))
        t_flat = jnp.pad(t_flat, (0, padded_n - n))
    x2d = x_flat.reshape(rows_padded, LANES)
    t2d = t_flat.reshape(rows_padded, LANES)

    tile = pl.BlockSpec((block_rows, LANES), lambda i: (i, 0))

    if reduction == "none":
        kernel = functools.partial(_focal_none_kernel, alpha=float(alpha),
                                   gamma=float(gamma), eps=float(eps))
        out2d = pl.pallas_call(
            kernel,
            out_shape=jax.ShapeDtypeStruct((rows_padded, LANES), out_dtype),
            grid_spec=pltpu.PrefetchScalarGridSpec(
                num_scalar_prefetch=0,
                grid=(num_blocks,),
                in_specs=[tile, tile],
                out_specs=tile,
            ),
            compiler_params=pltpu.CompilerParams(
                dimension_semantics=("parallel",),
                vmem_limit_bytes=_VMEM_LIMIT),
        )(x2d, t2d)
        out_flat = out2d.reshape(-1)
        if need_pad:
            out_flat = out_flat[:n]
        return out_flat.reshape(orig_shape)

    # 'mean' / 'sum'
    inv_denom = 1.0 / float(n) if reduction == "mean" else 1.0
    kernel = functools.partial(
        _focal_reduce_kernel, alpha=float(alpha), gamma=float(gamma),
        eps=float(eps), inv_denom=inv_denom, n_valid=n,
        block_rows=block_rows, need_mask=need_pad)
    out = pl.pallas_call(
        kernel,
        out_shape=jax.ShapeDtypeStruct((1, 1), jnp.float32),
        grid_spec=pltpu.PrefetchScalarGridSpec(
            num_scalar_prefetch=0,
            grid=(num_blocks,),
            in_specs=[tile, tile],
            out_specs=pl.BlockSpec((1, 1), lambda i: (0, 0)),
            scratch_shapes=[pltpu.VMEM((block_rows, LANES), jnp.float32)],
        ),
        compiler_params=pltpu.CompilerParams(
            dimension_semantics=("arbitrary",),
            vmem_limit_bytes=_VMEM_LIMIT),
    )(x2d, t2d)
    return out[0, 0].astype(out_dtype)


class BinaryFocalLossWithLogits:
    """JAX/Pallas port of kornia.losses.BinaryFocalLossWithLogits."""

    def __init__(self, alpha: float, gamma: float = 2.0,
                 reduction: str = "none") -> None:
        self.alpha = alpha
        self.gamma = gamma
        self.reduction = reduction
        self.eps = 1e-8

    def __call__(self, inputs, target):
        return binary_focal_loss_with_logits(
            inputs, target, self.alpha, self.gamma, self.reduction, self.eps)


# --------------------------------------------------------------------------
# Reference + test
# --------------------------------------------------------------------------
def _ref_loss(x, t, alpha, gamma, eps, reduction):
    loss = _focal_elementwise(x.astype(jnp.float32), t.astype(jnp.float32),
                              alpha, gamma, eps)
    if reduction == "mean":
        return jnp.mean(loss)
    if reduction == "sum":
        return jnp.sum(loss)
    return loss


if __name__ == "__main__":
    key = jax.random.PRNGKey(0)
    k1, k2 = jax.random.split(key)
    # (N, C, H, W) logits and matching binary targets.
    x = jax.random.normal(k1, (2, 4, 16, 16), dtype=jnp.float32)
    t = jax.random.bernoulli(k2, 0.3, (2, 4, 16, 16)).astype(jnp.float32)

    ok = True
    for reduction in ("none", "mean", "sum"):
        mod = BinaryFocalLossWithLogits(alpha=0.25, gamma=2.0,
                                        reduction=reduction)
        out = jax.block_until_ready(mod(x, t))
        ref = jax.block_until_ready(_ref_loss(x, t, 0.25, 2.0, 1e-8, reduction))
        # rtol accounts for the inherent conditioning of the kornia
        # formulation (1 - sigmoid(x) cancellation near saturation).
        if not bool(jnp.allclose(out, ref, rtol=1e-4, atol=1e-5)):
            ok = False

    print("KERNEL_OK" if ok else "KERNEL_MISMATCH")
</pallas_src>

<mosaic_0001>
module attributes {stable_mosaic.version = 11 : i64} {
  func.func @_focal_none_kernel(%arg0: i32, %arg1: memref<8x512xf32, #tpu.memory_space<vmem>>, %arg2: memref<8x512xf32, #tpu.memory_space<vmem>>, %arg3: memref<8x512xf32, #tpu.memory_space<vmem>>) attributes {dimension_semantics = [#tpu.dimension_semantics<parallel>], iteration_bounds = array<i64: 1>, scalar_prefetch = 0 : i64, scratch_operands = 0 : i64, tpu.core_type = #tpu.core_type<tc>, window_params = [{transform_indices = @transform_0, window_bounds = array<i64: 8, 512>}, {transform_indices = @transform_1, window_bounds = array<i64: 8, 512>}, {transform_indices = @transform_2, window_bounds = array<i64: 8, 512>}]} {
    %c0 = arith.constant 0 : index
    %c0_0 = arith.constant 0 : index
    %0 = vector.load %arg1[%c0, %c0_0] : memref<8x512xf32, #tpu.memory_space<vmem>>, vector<8x512xf32>
    %c0_1 = arith.constant 0 : index
    %c0_2 = arith.constant 0 : index
    %1 = vector.load %arg2[%c0_1, %c0_2] : memref<8x512xf32, #tpu.memory_space<vmem>>, vector<8x512xf32>
    %2 = arith.negf %0 : vector<8x512xf32>
    %3 = math.exp %2 : vector<8x512xf32>
    %cst = arith.constant 1.000000e+00 : f32
    %4 = vector.broadcast %cst : f32 to vector<8x512xf32>
    %5 = arith.addf %4, %3 : vector<8x512xf32>
    %6 = arith.divf %4, %5 : vector<8x512xf32>
    %cst_3 = arith.constant 1.000000e+00 : f32
    %7 = vector.broadcast %cst_3 : f32 to vector<8x512xf32>
    %8 = arith.subf %7, %6 : vector<8x512xf32>
    %cst_4 = arith.constant 9.99999993E-9 : f32
    %9 = vector.broadcast %cst_4 : f32 to vector<8x512xf32>
    %10 = arith.addf %8, %9 : vector<8x512xf32>
    %11 = arith.mulf %10, %10 : vector<8x512xf32>
    %cst_5 = arith.constant -2.500000e-01 : f32
    %12 = vector.broadcast %cst_5 : f32 to vector<8x512xf32>
    %13 = arith.mulf %12, %11 : vector<8x512xf32>
    %14 = arith.mulf %13, %1 : vector<8x512xf32>
    %cst_6 = arith.constant 9.99999993E-9 : f32
    %15 = vector.broadcast %cst_6 : f32 to vector<8x512xf32>
    %16 = arith.addf %6, %15 : vector<8x512xf32>
    %17 = math.log %16 : vector<8x512xf32>
    %18 = arith.mulf %14, %17 : vector<8x512xf32>
    %cst_7 = arith.constant 9.99999993E-9 : f32
    %19 = vector.broadcast %cst_7 : f32 to vector<8x512xf32>
    %20 = arith.addf %6, %19 : vector<8x512xf32>
    %21 = arith.mulf %20, %20 : vector<8x512xf32>
    %cst_8 = arith.constant 7.500000e-01 : f32
    %22 = vector.broadcast %cst_8 : f32 to vector<8x512xf32>
    %23 = arith.mulf %22, %21 : vector<8x512xf32>
    %cst_9 = arith.constant 1.000000e+00 : f32
    %24 = vector.broadcast %cst_9 : f32 to vector<8x512xf32>
    %25 = arith.subf %24, %1 : vector<8x512xf32>
    %26 = arith.mulf %23, %25 : vector<8x512xf32>
    %cst_10 = arith.constant 1.000000e+00 : f32
    %27 = vector.broadcast %cst_10 : f32 to vector<8x512xf32>
    %28 = arith.subf %27, %6 : vector<8x512xf32>
    %cst_11 = arith.constant 9.99999993E-9 : f32
    %29 = vector.broadcast %cst_11 : f32 to vector<8x512xf32>
    %30 = arith.addf %28, %29 : vector<8x512xf32>
    %31 = math.log %30 : vector<8x512xf32>
    %32 = arith.mulf %26, %31 : vector<8x512xf32>
    %33 = arith.subf %18, %32 : vector<8x512xf32>
    %c0_12 = arith.constant 0 : index
    %c0_13 = arith.constant 0 : index
    %34 = vector.load %arg3[%c0_12, %c0_13] : memref<8x512xf32, #tpu.memory_space<vmem>>, vector<8x512xf32>
    tpu.vector_store %arg3[%c0_12, %c0_13], %33 {strides = array<i32>} : memref<8x512xf32, #tpu.memory_space<vmem>>, vector<8x512xf32>,
    return
  }
  func.func @transform_0(%arg0: i32) -> (i32, i32) {
    %c0_i32 = arith.constant 0 : i32
    %c0_i32_0 = arith.constant 0 : i32
    return %arg0, %c0_i32 : i32, i32
  }
  func.func @transform_1(%arg0: i32) -> (i32, i32) {
    %c0_i32 = arith.constant 0 : i32
    %c0_i32_0 = arith.constant 0 : i32
    return %arg0, %c0_i32 : i32, i32
  }
  func.func @transform_2(%arg0: i32) -> (i32, i32) {
    %c0_i32 = arith.constant 0 : i32
    %c0_i32_0 = arith.constant 0 : i32
    return %arg0, %c0_i32 : i32, i32
  }
}

</mosaic_0001>

<bundles_post_ra>
// kernel: tpu_custom_call.1
= control target key start
LH: loop header
LB: loop body
LE: loop exit
PB: predicated region body
PF: predicated region fallthrough
CT: control target
= control target key end

     0   :  { %7 = vsyncpa [#allocation3], 0  ;;  %s321_s0 = inlined_call_operand.hbm [shape: f32[8,512], index: 0, kind: input, shape index: {}]   ;;  %s322_s1 = inlined_call_operand.hbm [shape: f32[8,512], index: 1, kind: input, shape index: {}]   ;;  %s323_s2 = inlined_call_operand.hbm [shape: f32[8,512], index: 2, kind: output, shape index: {}]  }
   0x1   :  { %8 = vsyncpa [#allocation6], 0 }
   0x2   :  { %9 = vsyncpa [#allocation4], 0  ;;  %s267_s9 = smov [#allocation2]   ;;  %s268_s11 = smov [#allocation5]  }
   0x3   :  { %s16_s10 = sshll.u32 %s267_s9, 4  ;;  %s26_s12 = sshll.u32 %s268_s11, 4  ;;  %s17_s10 = int_to_ptr.vmem [resolvable:$true] %s16_s10  ;;  %s27_s12 = int_to_ptr.vmem [resolvable:$true] %s26_s12 }
   0x4   :  { %s195_s15 = scalar_lea.hbm %s321_s0, 512 }
   0x5   :  { %p196_p0 = scmp.ne.s32.totalorder %s321_s0, %s195_s15  ;;  %p199_p1 = scmp.lt.u32.totalorder %s195_s15, %s321_s0 }
   0x7   :  { %p201_p2 = pnand %p199_p1, %p196_p0 }
   0x9   :  { %204 = shalt.err (!%p201_p2)
}
   0xa   :  { %s205_s20 = scalar_lea.vmem %s17_s10, 512  ;;  %p210_p4 = scmp.lt.s32.totalorder %s17_s10, %s17_s10 }
   0xb   :  { %p206_p3 = scmp.ne.s32.totalorder %s17_s10, %s205_s20  ;;  %p211_p5 = scmp.lt.s32.totalorder %s205_s20, %s205_s20 }
   0xd   :  { %p212_p6 = por %p211_p5, %p210_p4 }
   0xf   :  { %p213_p7 = pnand %p212_p6, %p206_p3 }
  0x11   :  { %216 = shalt.err (!%p213_p7)
}
  0x12   :  { %19 = dma.hbm_to_vmem [thread:$0]  %s321_s0, 512, %s17_s10, [#allocation3]  }
  0x13   :  { %s217_s25 = scalar_lea.hbm %s322_s1, 512 }
  0x14   :  { %p218_p8 = scmp.ne.s32.totalorder %s322_s1, %s217_s25  ;;  %p221_p9 = scmp.lt.u32.totalorder %s217_s25, %s322_s1 }
  0x16   :  { %p223_p10 = pnand %p221_p9, %p218_p8 }
  0x18   :  { %226 = shalt.err (!%p223_p10)
}
  0x19   :  { %s227_s30 = scalar_lea.vmem %s27_s12, 512  ;;  %p232_p12 = scmp.lt.s32.totalorder %s27_s12, %s27_s12 }
  0x1a   :  { %p228_p11 = scmp.ne.s32.totalorder %s27_s12, %s227_s30  ;;  %p233_p13 = scmp.lt.s32.totalorder %s227_s30, %s227_s30 }
  0x1c   :  { %p234_p0 = por %p233_p13, %p232_p12 }
  0x1e   :  { %p235_p1 = pnand %p234_p0, %p228_p11 }
  0x20   :  { %238 = shalt.err (!%p235_p1)
}
  0x21   :  { %29 = dma.hbm_to_vmem [thread:$0]  %s322_s1, 512, %s27_s12, [#allocation6]  }
  0x22   :  { %261 = dma.done.wait [#allocation3], 512  }
  0x23   :  { %262 = vsyncadd [#allocation3], 4294966784 }
  0x24   :  { %263 = dma.done.wait [#allocation6], 512  }
  0x25   :  { %264 = vsyncadd [#allocation6], 4294966784  ;;  %v36_v0 = vld [vmem:[#allocation2] sm:$0xff]  ;;  %v37_v1 = vld [vmem:[#allocation2 + $0x8] sm:$0xff]  ;;  %s269_s1 = smov [#allocation7]  }
  0x26   :  { %v156_v2 = vmul.f32 -1.442695, %v36_v0  ;;  %v157_v3 = vmul.f32 -1.442695, %v37_v1  ;;  %v38_v4 = vld [vmem:[#allocation2 + $0x10] sm:$0xff]  ;;  %v39_v5 = vld [vmem:[#allocation2 + $0x18] sm:$0xff] }
  0x27   :  { %v158_v6 = vmul.f32 -1.442695, %v38_v4  ;;  %v159_v7 = vmul.f32 -1.442695, %v39_v5  ;;  %v40_v32 = vld [vmem:[#allocation5] sm:$0xff]  ;;  %v41_v35 = vld [vmem:[#allocation5 + $0x8] sm:$0xff] }
  0x28   :  { %163 = vpow2.f32 %v156_v2  ;;  %v42_v38 = vld [vmem:[#allocation5 + $0x10] sm:$0xff]  ;;  %v112_v43 = vsub.f32 1.0, %v40_v32  ;;  %v113_v45 = vsub.f32 1.0, %v41_v35  ;;  %v43_v61 = vld [vmem:[#allocation5 + $0x18] sm:$0xff]  ;;  %s146_s4 = sshll.u32 %s269_s1, 4  ;;  %s147_s4 = int_to_ptr.vmem [resolvable:$true] %s146_s4 }
  0x29   :  { %165 = vpow2.f32 %v157_v3  ;;  %v114_v49 = vsub.f32 1.0, %v42_v38  ;;  %s239_s5 = scalar_lea.vmem %s147_s4, 512  ;;  %p244_p3 = scmp.lt.s32.totalorder %s147_s4, %s147_s4 }
  0x2a   :  { %167 = vpow2.f32 %v158_v6  ;;  %p240_p2 = scmp.ne.s32.totalorder %s147_s4, %s239_s5  ;;  %p245_p4 = scmp.lt.s32.totalorder %s239_s5, %s239_s5 }
  0x2b   :  { %169 = vpow2.f32 %v159_v7 }
  0x2c   :  { %p246_p5 = por %p245_p4, %p244_p3 }
  0x2e   :  { %p247_p6 = pnand %p246_p5, %p240_p2 }
  0x32   :  { %v164_v8 = vpop.eup %163 }
  0x33   :  { %v166_v9 = vpop.eup %165  ;;  %v56_v10 = vadd.f32 1.0, %v164_v8 }
  0x34   :  { %v168_v11 = vpop.eup %167  ;;  %v57_v12 = vadd.f32 1.0, %v166_v9 }
  0x35   :  { %v170_v13 = vpop.eup %169  ;;  %171 = vrcp.f32 %v56_v10  ;;  %v58_v14 = vadd.f32 1.0, %v168_v11  ;;  %v115_v11 = vsub.f32 1.0, %v43_v61 }
  0x36   :  { %173 = vrcp.f32 %v57_v12  ;;  %v59_v15 = vadd.f32 1.0, %v170_v13 }
  0x37   :  { %175 = vrcp.f32 %v58_v14 }
  0x38   :  { %177 = vrcp.f32 %v59_v15 }
  0x3f   :  { %v172_v16 = vpop.eup %171 }
  0x40   :  { %v174_v17 = vpop.eup %173  ;;  %v68_v18 = vsub.f32 1.0, %v172_v16  ;;  %v88_v19 = vadd.f32 1e-08, %v172_v16 }
  0x41   :  { %v176_v20 = vpop.eup %175  ;;  %v69_v21 = vsub.f32 1.0, %v174_v17  ;;  %v89_v22 = vadd.f32 1e-08, %v174_v17 }
  0x42   :  { %v72_v23 = vadd.f32 1e-08, %v68_v18  ;;  %179 = vlog2.f32 %v88_v19  ;;  %v70_v24 = vsub.f32 1.0, %v176_v20  ;;  %v90_v26 = vadd.f32 1e-08, %v176_v20  ;;  %v178_v29 = vpop.eup %177 }
  0x43   :  { %v73_v25 = vadd.f32 1e-08, %v69_v21  ;;  %181 = vlog2.f32 %v89_v22  ;;  %v104_v30 = vmul.f32 %v88_v19, %v88_v19  ;;  %v105_v33 = vmul.f32 %v89_v22, %v89_v22 }
  0x44   :  { %v76_v27 = vmul.f32 %v72_v23, %v72_v23  ;;  %183 = vlog2.f32 %v72_v23  ;;  %v74_v28 = vadd.f32 1e-08, %v70_v24  ;;  %v106_v39 = vmul.f32 %v90_v26, %v90_v26 }
  0x45   :  { %v77_v31 = vmul.f32 %v73_v25, %v73_v25  ;;  %185 = vlog2.f32 %v73_v25  ;;  %v71_v40 = vsub.f32 1.0, %v178_v29  ;;  %v91_v41 = vadd.f32 1e-08, %v178_v29 }
  0x46   :  { %187 = vlog2.f32 %v90_v26  ;;  %v80_v34 = vmul.f32 -0.25, %v76_v27  ;;  %v78_v36 = vmul.f32 %v74_v28, %v74_v28  ;;  %v108_v42 = vmul.f32 0.75, %v104_v30 }
  0x47   :  { %189 = vlog2.f32 %v74_v28  ;;  %v81_v37 = vmul.f32 -0.25, %v77_v31  ;;  %v109_v44 = vmul.f32 0.75, %v105_v33  ;;  %v75_v46 = vadd.f32 1e-08, %v71_v40 }
  0x48   :  { %191 = vlog2.f32 %v91_v41  ;;  %v84_v47 = vmul.f32 %v80_v34, %v40_v32  ;;  %v82_v48 = vmul.f32 -0.25, %v78_v36  ;;  %v110_v52 = vmul.f32 0.75, %v106_v39 }
  0x49   :  { %v85_v51 = vmul.f32 %v81_v37, %v41_v35  ;;  %v79_v53 = vmul.f32 %v75_v46, %v75_v46  ;;  %193 = vlog2.f32 %v75_v46  ;;  %v116_v56 = vmul.f32 %v112_v43, %v108_v42 }
  0x4a   :  { %v107_v57 = vmul.f32 %v91_v41, %v91_v41  ;;  %v117_v60 = vmul.f32 %v113_v45, %v109_v44  ;;  %v86_v1 = vmul.f32 %v82_v48, %v42_v38  ;;  %v118_v6 = vmul.f32 %v114_v49, %v110_v52 }
  0x4b   :  { %v83_v2 = vmul.f32 -0.25, %v79_v53 }
  0x4c   :  { %v180_v50 = vpop.eup %179  ;;  %v111_v10 = vmul.f32 0.75, %v107_v57 }
  0x4d   :  { %v182_v54 = vpop.eup %181  ;;  %v93_v55 = vmul.f32 0.6931472, %v180_v50  ;;  %v87_v16 = vmul.f32 %v83_v2, %v43_v61 }
  0x4e   :  { %v184_v58 = vpop.eup %183  ;;  %v95_v59 = vmul.f32 0.6931472, %v182_v54  ;;  %v119_v21 = vmul.f32 %v115_v11, %v111_v10 }
  0x4f   :  { %v186_v62 = vpop.eup %185  ;;  %v100_v63 = vmul.f32 %v93_v55, %v84_v47  ;;  %v121_v0 = vmul.f32 0.6931472, %v184_v58 }
  0x50   :  { %v188_v3 = vpop.eup %187  ;;  %v101_v4 = vmul.f32 %v95_v59, %v85_v51  ;;  %v123_v5 = vmul.f32 0.6931472, %v186_v62 }
  0x51   :  { %v190_v7 = vpop.eup %189  ;;  %v128_v8 = vmul.f32 %v121_v0, %v116_v56  ;;  %v97_v9 = vmul.f32 0.6931472, %v188_v3 }
  0x52   :  { %v129_v12 = vmul.f32 %v123_v5, %v117_v60  ;;  %v125_v13 = vmul.f32 0.6931472, %v190_v7  ;;  %v192_v17 = vpop.eup %191 }
  0x53   :  { %v132_v14 = vsub.f32 %v100_v63, %v128_v8  ;;  %v102_v15 = vmul.f32 %v97_v9, %v86_v1  ;;  %v99_v20 = vmul.f32 0.6931472, %v192_v17  ;;  %v194_v22 = vpop.eup %193 }
  0x54   :  { %v133_v18 = vsub.f32 %v101_v4, %v129_v12  ;;  %v130_v19 = vmul.f32 %v125_v13, %v118_v6  ;;  %v127_v25 = vmul.f32 0.6931472, %v194_v22 }
  0x55   :  { %136 = vst [vmem:[#allocation7] sm:$0xff] %v132_v14  ;;  %v103_v24 = vmul.f32 %v99_v20, %v87_v16 }
  0x56   :  { %137 = vst [vmem:[#allocation7 + $0x8] sm:$0xff] %v133_v18  ;;  %v134_v23 = vsub.f32 %v102_v15, %v130_v19  ;;  %v131_v26 = vmul.f32 %v127_v25, %v119_v21 }
  0x58   :  { %138 = vst [vmem:[#allocation7 + $0x10] sm:$0xff] %v134_v23  ;;  %v135_v27 = vsub.f32 %v103_v24, %v131_v26 }
  0x5a   :  { %139 = vst [vmem:[#allocation7 + $0x18] sm:$0xff] %v135_v27 }
  0x5b   :  { %250 = shalt.err (!%p247_p6)
}
  0x5c   :  { %s251_s8 = scalar_lea.hbm %s323_s2, 512 }
  0x5d   :  { %p252_p7 = scmp.ne.s32.totalorder %s323_s2, %s251_s8  ;;  %p255_p8 = scmp.lt.u32.totalorder %s251_s8, %s323_s2 }
  0x5f   :  { %p257_p9 = pnand %p255_p8, %p252_p7 }
  0x61   :  { %260 = shalt.err (!%p257_p9)
}
  0x62   :  { %149 = dma.vmem_to_hbm [thread:$0]  %s147_s4, 512, %s323_s2, [#allocation4]  }
  0x63   :  { %265 = dma.done.wait [#allocation4], 512  }
  0x64   :  { %266 = vsyncadd [#allocation4], 4294966784 }
  0x65   :  { %153 = vsyncpa [#allocation3], 1 }
  0x66   :  { %154 = vsyncpa [#allocation6], 1 }
  0x67   :  { %155 = vsyncpa [#allocation4], 1 }

</bundles_post_ra>
